<compile_context>
chip_gen: v7x
topology: tpu7x:2x2x1
jax: 0.10.0
libtpu: 0.0.40
codegen_flags: <defaults>
</compile_context>

<pallas_src>
import functools

import jax
import jax.numpy as jnp
from jax.experimental import pallas as pl
from jax.experimental.pallas import tpu as pltpu


def _round_up(n, m):
    return ((n + m - 1) // m) * m


def _cdiv(a, b):
    return (a + b - 1) // b


def _default_bf16_transcendentals():
    # bf16 VPU/EUP exists on v6e/v7x; v5e and older have no bf16 math path.
    try:
        kind = jax.devices()[0].device_kind.lower()
    except Exception:
        kind = ""
    return any(t in kind for t in ("v6", "v7", "7x"))


def bin_encoder_kernel(x_ref, w1_ref, b1_ref, w2_ref, b2_ref, out_ref, *,
                       bf16_eup):
    # fc1: cast x f32->bf16 in-kernel (cheap VPU op hidden under MXU work).
    x = x_ref[...].astype(jnp.bfloat16)
    h = jnp.dot(x, w1_ref[...], preferred_element_type=jnp.float32)
    h = h + b1_ref[...]                                # f32 bias add (VPU)
    # Softplus, single path: one exp + one log per element (EUP).
    if bf16_eup:                                       # v6e/v7x: bf16 EUP ~2x
        hb = h.astype(jnp.bfloat16)
        hsp = jnp.maximum(hb, 0) + jnp.log(1.0 + jnp.exp(-jnp.abs(hb)))
    else:                                              # v5e: keep epilogue f32
        sp = jnp.maximum(h, 0.0) + jnp.log1p(jnp.exp(-jnp.abs(h)))
        hsp = sp.astype(jnp.bfloat16)
    # fc2 on MXU (bf16 inputs, f32 accumulate). Padded hidden lanes hold
    # softplus(0)=ln2 but the matching w2 rows are exactly zero (see
    # prepare_bin_encoder_params), so they contribute nothing.
    z = jnp.dot(hsp, w2_ref[...], preferred_element_type=jnp.float32)
    z = z + b2_ref[...]
    # Sigmoid via one EUP tanh: sigmoid(z) = 0.5*tanh(z/2) + 0.5
    if bf16_eup:
        p = 0.5 * jnp.tanh(0.5 * z.astype(jnp.bfloat16)) + 0.5
    else:
        p = 0.5 * jnp.tanh(0.5 * z) + 0.5
    out_ref[...] = p.astype(out_ref.dtype)


def prepare_bin_encoder_params(w1_t, b1, w2_t, b2):
    """One-time parameter packing (hoisted out of the per-call path).

    w1_t: [item_size, hidden] (fc1 weight pre-transposed), b1: [hidden]
    w2_t: [hidden, x_dim]     (fc2 weight pre-transposed), b2: [x_dim]

    The hidden axis is zero-padded to a multiple of 128 (lane-dense MXU
    operands).  INVARIANT: padded w2 rows and padded b1 lanes are exactly
    zero, so softplus(0)=ln2 in the padded hidden lanes cannot leak into the
    output.  Do not feed pre-padded weights with junk rows to bin_encoder.
    """
    item_size, hidden = w1_t.shape
    x_dim = w2_t.shape[1]
    hid_p = _round_up(hidden, 128)
    w1_p = jnp.zeros((item_size, hid_p), jnp.bfloat16).at[:, :hidden].set(
        w1_t.astype(jnp.bfloat16))
    b1_p = jnp.zeros((1, hid_p), jnp.float32).at[:, :hidden].set(
        b1.astype(jnp.float32)[None, :])
    w2_p = jnp.zeros((hid_p, x_dim), jnp.bfloat16).at[:hidden, :].set(
        w2_t.astype(jnp.bfloat16))
    b2_p = b2.astype(jnp.float32)[None, :]
    return {"w1": w1_p, "b1": b1_p, "w2": w2_p, "b2": b2_p,
            "item_size": item_size, "hidden": hidden, "x_dim": x_dim}


def bin_encoder(x, params, *, block_b=2048, out_dtype=jnp.bfloat16,
                bf16_transcendentals=None):
    """x: [B, item_size] float -> p: [B, x_dim] in out_dtype."""
    B, item_size = x.shape
    assert item_size == params["item_size"]
    x_dim = params["x_dim"]
    w1_p, b1_p, w2_p, b2_p = params["w1"], params["b1"], params["w2"], params["b2"]
    hid_p = w1_p.shape[1]

    if bf16_transcendentals is None:
        bf16_transcendentals = _default_bf16_transcendentals()

    # Balanced batch tiling: bounds padding waste to <16 rows per tile and
    # keeps >=2 grid steps (when B allows) so v7x uses both TensorCores.
    # At block_b=2048 the double-buffered x/out tiles + f32 intermediates are
    # a few MiB — inside every generation's scoped-VMEM default.  Raise
    # vmem_limit_bytes before pushing block_b past ~8192 on v7x (64 MiB VMEM).
    num_tiles = max(_cdiv(B, block_b), 2 if B >= 32 else 1)
    tb = _round_up(_cdiv(B, num_tiles), 16)
    b_pad = num_tiles * tb
    x_p = x if b_pad == B else jnp.pad(x, ((0, b_pad - B), (0, 0)))

    kernel = functools.partial(bin_encoder_kernel,
                               bf16_eup=bf16_transcendentals)

    out = pl.pallas_call(
        kernel,
        out_shape=jax.ShapeDtypeStruct((b_pad, x_dim), out_dtype),
        grid_spec=pltpu.PrefetchScalarGridSpec(
            num_scalar_prefetch=0,
            grid=(num_tiles,),
            in_specs=[
                # x tile walks the batch; weights/biases stay VMEM-resident.
                pl.BlockSpec((tb, item_size), lambda i: (i, 0)),
                pl.BlockSpec((item_size, hid_p), lambda i: (0, 0)),
                pl.BlockSpec((1, hid_p), lambda i: (0, 0)),
                pl.BlockSpec((hid_p, x_dim), lambda i: (0, 0)),
                pl.BlockSpec((1, x_dim), lambda i: (0, 0)),
            ],
            # Unpadded output block (last dim == x_dim, full array dim) in
            # bf16: 16x fewer writeback bytes than the old padded f32 slab.
            # TODO(synk): if a profile shows exposed output writeback, try
            # pipeline_mode=pl.Buffered(3) on this spec.
            out_specs=pl.BlockSpec((tb, x_dim), lambda i: (i, 0)),
        ),
        compiler_params=pltpu.CompilerParams(
            dimension_semantics=("parallel",),  # batch shards across TCs (v7x)
        ),
    )(x_p, w1_p, b1_p, w2_p, b2_p)

    return out if b_pad == B else out[:B]


def _reference_f32(x, w1_t, b1, w2_t, b2):
    h = jax.nn.softplus(jnp.dot(x, w1_t) + b1)
    return jax.nn.sigmoid(jnp.dot(h, w2_t) + b2)


def _mirror_reference(x, w1_t, b1, w2_t, b2, *, bf16_eup, out_dtype):
    """Mirrors the kernel's dtype path (bf16 MXU inputs, f32 accumulate,
    optional bf16 transcendentals, out_dtype store)."""
    h = jnp.dot(x.astype(jnp.bfloat16), w1_t.astype(jnp.bfloat16),
                preferred_element_type=jnp.float32) + b1.astype(jnp.float32)
    if bf16_eup:
        hb = h.astype(jnp.bfloat16)
        hsp = jnp.maximum(hb, 0) + jnp.log(1.0 + jnp.exp(-jnp.abs(hb)))
    else:
        sp = jnp.maximum(h, 0.0) + jnp.log1p(jnp.exp(-jnp.abs(h)))
        hsp = sp.astype(jnp.bfloat16)
    z = jnp.dot(hsp, w2_t.astype(jnp.bfloat16),
                preferred_element_type=jnp.float32) + b2.astype(jnp.float32)
    if bf16_eup:
        p = 0.5 * jnp.tanh(0.5 * z.astype(jnp.bfloat16)) + 0.5
    else:
        p = 0.5 * jnp.tanh(0.5 * z) + 0.5
    return p.astype(out_dtype)


if __name__ == "__main__":
    # BinEncoder(item_size, x_dim, hidden_dim) at small shapes
    item_size, x_dim, hidden_dim = 32, 16, 64
    batch = 8

    key = jax.random.PRNGKey(0)
    kx, kw1, kb1, kw2, kb2 = jax.random.split(key, 5)

    # Kaiming-uniform-like bounds (nn.Linear scale); weights stored
    # pre-transposed as [in_features, out_features].
    bound1 = 1.0 / (item_size ** 0.5)
    bound2 = 1.0 / (hidden_dim ** 0.5)
    w1_t = jax.random.uniform(kw1, (item_size, hidden_dim), jnp.float32,
                              -bound1, bound1)
    b1 = jax.random.uniform(kb1, (hidden_dim,), jnp.float32, -bound1, bound1)
    w2_t = jax.random.uniform(kw2, (hidden_dim, x_dim), jnp.float32,
                              -bound2, bound2)
    b2 = jax.random.uniform(kb2, (x_dim,), jnp.float32, -bound2, bound2)
    x = jax.random.normal(kx, (batch, item_size), jnp.float32)

    # One-time parameter packing (hoisted out of the per-call path).
    params = prepare_bin_encoder_params(w1_t, b1, w2_t, b2)
    bf16_eup = _default_bf16_transcendentals()
    p_f32ref = _reference_f32(x, w1_t, b1, w2_t, b2)

    # Device-default configuration (bf16 output; bf16 EUP on v6e/v7x).
    p = jax.block_until_ready(bin_encoder(x, params))
    assert p.shape == (batch, x_dim)
    p_mirror = _mirror_reference(x, w1_t, b1, w2_t, b2, bf16_eup=bf16_eup,
                                 out_dtype=jnp.bfloat16)
    assert jnp.allclose(p.astype(jnp.float32), p_mirror.astype(jnp.float32),
                        atol=2e-2, rtol=2e-2)
    assert jnp.allclose(p.astype(jnp.float32), p_f32ref, atol=5e-2, rtol=5e-2)

    # Tight check of the f32-epilogue path (runs identically on every gen).
    p32 = jax.block_until_ready(
        bin_encoder(x, params, out_dtype=jnp.float32,
                    bf16_transcendentals=False))
    p32_mirror = _mirror_reference(x, w1_t, b1, w2_t, b2, bf16_eup=False,
                                   out_dtype=jnp.float32)
    assert jnp.allclose(p32, p32_mirror, atol=2e-3, rtol=2e-3)
    assert jnp.allclose(p32, p_f32ref, atol=3e-2, rtol=3e-2)

    print("KERNEL_OK")
</pallas_src>

<mosaic_0001>
module attributes {stable_mosaic.version = 11 : i64} {
  func.func @bin_encoder_kernel(%arg0: i32, %arg1: memref<16x32xf32, #tpu.memory_space<vmem>>, %arg2: memref<32x128xbf16, #tpu.memory_space<vmem>>, %arg3: memref<1x128xf32, #tpu.memory_space<vmem>>, %arg4: memref<128x16xbf16, #tpu.memory_space<vmem>>, %arg5: memref<1x16xf32, #tpu.memory_space<vmem>>, %arg6: memref<16x16xbf16, #tpu.memory_space<vmem>>) attributes {dimension_semantics = [#tpu.dimension_semantics<parallel>], iteration_bounds = array<i64: 1>, scalar_prefetch = 0 : i64, scratch_operands = 0 : i64, tpu.core_type = #tpu.core_type<tc>, window_params = [{transform_indices = @transform_0, window_bounds = array<i64: 16, 32>}, {pipeline_mode = #tpu.pipeline_mode<synchronous>, transform_indices = @transform_1, window_bounds = array<i64: 32, 128>}, {pipeline_mode = #tpu.pipeline_mode<synchronous>, transform_indices = @transform_2, window_bounds = array<i64: 1, 128>}, {pipeline_mode = #tpu.pipeline_mode<synchronous>, transform_indices = @transform_3, window_bounds = array<i64: 128, 16>}, {pipeline_mode = #tpu.pipeline_mode<synchronous>, transform_indices = @transform_4, window_bounds = array<i64: 1, 16>}, {transform_indices = @transform_5, window_bounds = array<i64: 16, 16>}]} {
    %c0 = arith.constant 0 : index
    %c0_0 = arith.constant 0 : index
    %0 = vector.load %arg1[%c0, %c0_0] : memref<16x32xf32, #tpu.memory_space<vmem>>, vector<16x32xf32>
    %1 = arith.truncf %0 : vector<16x32xf32> to vector<16x32xbf16>
    %c0_1 = arith.constant 0 : index
    %c0_2 = arith.constant 0 : index
    %2 = vector.load %arg2[%c0_1, %c0_2] : memref<32x128xbf16, #tpu.memory_space<vmem>>, vector<32x128xbf16>
    %cst = arith.constant dense<0.000000e+00> : vector<16x128xf32>
    %3 = tpu.matmul %1, %2, %cst {dimension_numbers = #tpu.dot_dimension_numbers<[1], [0], [0], [1], [0, 0, 1, 1], [], []>} : vector<16x32xbf16>, vector<32x128xbf16>, vector<16x128xf32> -> vector<16x128xf32>
    %c0_3 = arith.constant 0 : index
    %c0_4 = arith.constant 0 : index
    %4 = vector.load %arg3[%c0_3, %c0_4] : memref<1x128xf32, #tpu.memory_space<vmem>>, vector<1x128xf32>
    %5 = vector.broadcast %4 : vector<1x128xf32> to vector<16x128xf32>
    %6 = arith.addf %3, %5 : vector<16x128xf32>
    %cst_5 = arith.constant 0.000000e+00 : f32
    %7 = vector.broadcast %cst_5 : f32 to vector<16x128xf32>
    %8 = arith.maximumf %6, %7 : vector<16x128xf32>
    %9 = math.absf %6 : vector<16x128xf32>
    %cst_6 = arith.constant 0.000000e+00 : f32
    %10 = vector.broadcast %cst_6 : f32 to vector<16x128xf32>
    %11 = arith.subf %10, %9 : vector<16x128xf32>
    %12 = math.exp %11 : vector<16x128xf32>
    %13 = math.log1p %12 : vector<16x128xf32>
    %14 = arith.addf %8, %13 : vector<16x128xf32>
    %15 = arith.truncf %14 : vector<16x128xf32> to vector<16x128xbf16>
    %c0_7 = arith.constant 0 : index
    %c0_8 = arith.constant 0 : index
    %16 = vector.load %arg4[%c0_7, %c0_8] : memref<128x16xbf16, #tpu.memory_space<vmem>>, vector<128x16xbf16>
    %cst_9 = arith.constant dense<0.000000e+00> : vector<16x16xf32>
    %17 = tpu.matmul %15, %16, %cst_9 {dimension_numbers = #tpu.dot_dimension_numbers<[1], [0], [0], [1], [0, 0, 1, 1], [], []>} : vector<16x128xbf16>, vector<128x16xbf16>, vector<16x16xf32> -> vector<16x16xf32>
    %c0_10 = arith.constant 0 : index
    %c0_11 = arith.constant 0 : index
    %18 = vector.load %arg5[%c0_10, %c0_11] : memref<1x16xf32, #tpu.memory_space<vmem>>, vector<1x16xf32>
    %19 = vector.broadcast %18 : vector<1x16xf32> to vector<16x16xf32>
    %20 = arith.addf %17, %19 : vector<16x16xf32>
    %cst_12 = arith.constant 5.000000e-01 : f32
    %21 = vector.broadcast %cst_12 : f32 to vector<16x16xf32>
    %22 = arith.mulf %21, %20 : vector<16x16xf32>
    %23 = math.tanh %22 : vector<16x16xf32>
    %cst_13 = arith.constant 5.000000e-01 : f32
    %24 = vector.broadcast %cst_13 : f32 to vector<16x16xf32>
    %25 = arith.mulf %24, %23 : vector<16x16xf32>
    %cst_14 = arith.constant 5.000000e-01 : f32
    %26 = vector.broadcast %cst_14 : f32 to vector<16x16xf32>
    %27 = arith.addf %25, %26 : vector<16x16xf32>
    %28 = arith.truncf %27 : vector<16x16xf32> to vector<16x16xbf16>
    %c0_15 = arith.constant 0 : index
    %c0_16 = arith.constant 0 : index
    %29 = vector.load %arg6[%c0_15, %c0_16] : memref<16x16xbf16, #tpu.memory_space<vmem>>, vector<16x16xbf16>
    tpu.vector_store %arg6[%c0_15, %c0_16], %28 {strides = array<i32>} : memref<16x16xbf16, #tpu.memory_space<vmem>>, vector<16x16xbf16>,
    return
  }
  func.func @transform_0(%arg0: i32) -> (i32, i32) {
    %c0_i32 = arith.constant 0 : i32
    %c0_i32_0 = arith.constant 0 : i32
    return %arg0, %c0_i32 : i32, i32
  }
  func.func @transform_1(%arg0: i32) -> (i32, i32) {
    %c0_i32 = arith.constant 0 : i32
    %c0_i32_0 = arith.constant 0 : i32
    %c0_i32_1 = arith.constant 0 : i32
    return %c0_i32, %c0_i32_0 : i32, i32
  }
  func.func @transform_2(%arg0: i32) -> (i32, i32) {
    %c0_i32 = arith.constant 0 : i32
    %c0_i32_0 = arith.constant 0 : i32
    %c0_i32_1 = arith.constant 0 : i32
    return %c0_i32, %c0_i32_0 : i32, i32
  }
  func.func @transform_3(%arg0: i32) -> (i32, i32) {
    %c0_i32 = arith.constant 0 : i32
    %c0_i32_0 = arith.constant 0 : i32
    %c0_i32_1 = arith.constant 0 : i32
    return %c0_i32, %c0_i32_0 : i32, i32
  }
  func.func @transform_4(%arg0: i32) -> (i32, i32) {
    %c0_i32 = arith.constant 0 : i32
    %c0_i32_0 = arith.constant 0 : i32
    %c0_i32_1 = arith.constant 0 : i32
    return %c0_i32, %c0_i32_0 : i32, i32
  }
  func.func @transform_5(%arg0: i32) -> (i32, i32) {
    %c0_i32 = arith.constant 0 : i32
    %c0_i32_0 = arith.constant 0 : i32
    return %arg0, %c0_i32 : i32, i32
  }
}

</mosaic_0001>

<bundles_post_ra>
// kernel: tpu_custom_call.1
= control target key start
LH: loop header
LB: loop body
LE: loop exit
PB: predicated region body
PF: predicated region fallthrough
CT: control target
= control target key end

     0   :  { %v379_v1 = vmov 0.0   ;;  %vm380_vm0 = vmmov 0   ;;  %vm48_vm1 = vcmask 261120   ;;  %s468_s0 = inlined_call_operand.vmem [shape: f32[16,32], index: 0, kind: input, shape index: {}]   ;;  %s469_s1 = inlined_call_operand.vmem [shape: bf16[32,128], index: 1, kind: input, shape index: {}]   ;;  %s470_s2 = inlined_call_operand.vmem [shape: f32[1,128], index: 2, kind: input, shape index: {}]   ;;  %s471_s3 = inlined_call_operand.vmem [shape: bf16[128,16], index: 3, kind: input, shape index: {}]   ;;  %s472_s4 = inlined_call_operand.vmem [shape: f32[1,16], index: 4, kind: input, shape index: {}]   ;;  %s473_s5 = inlined_call_operand.hbm [shape: bf16[16,16], index: 5, kind: output, shape index: {}]  }
   0x1   :  { %v333_v0 = vld [vmem:[%s469_s1] sm:$0xff]   ;;  %300 = vmatprep.subr.bf16.mxu0 %v379_v1  ;;  %308 = vmatprep.subr.bf16.mxu1 %v379_v1  ;;  %v334_v2 = vld [vmem:[%s469_s1 + $0x8] sm:$0xff]  }
   0x2   :  { %301 = vmatpush3.bf16.msra.mxu0 %v333_v0  ;;  %304 = vmatprep.mubr.msk.bf16.mxu0 %vm380_vm0, %v379_v1  ;;  %v22_v3 = vld [vmem:[%s468_s0] sm:$0xff]  ;;  %v23_v4 = vld [vmem:[%s468_s0 + $0x8] sm:$0xff] }
   0x3   :  { %302 = vmatprep.subr.bf16.mxu0 %v379_v1  ;;  %324 = vmatprep.mubr.msk.bf16.mxu1 %vm380_vm0, %v379_v1  ;;  %v24_v5 = vpack.c.bf16 %v23_v4, %v22_v3 }
   0x6   :  { %303 = vmatpush3.bf16.msra.mxu0 %v334_v2 }
   0x7   :  { %10 = vsyncpa [#allocation3], 0  ;;  %v335_v6 = vld [vmem:[%s471_s3] sm:$0xff]   ;;  %v336_v7 = vld [vmem:[%s471_s3 + $0x8] sm:$0xff]   ;;  %vm252_vm4 = vcmask 125952   ;;  %s381_s17 = smov [#allocation2]  }
   0x8   :  { %309 = vmatpush3.bf16.msra.mxu1 %v335_v6  ;;  %v337_v8 = vld [vmem:[%s471_s3 + $0x10] sm:$0xff]   ;;  %v338_v9 = vld [vmem:[%s471_s3 + $0x18] sm:$0xff]   ;;  %v339_v10 = vld [vmem:[%s471_s3 + $0x20] sm:$0xff]   ;;  %s260_s18 = sshll.u32 %s381_s17, 4  ;;  %s261_s18 = int_to_ptr.vmem [resolvable:$true] %s260_s18 }
   0x9   :  { %305 = vmatmul.mubr.msk.bf16.vlgmr.msra.gmra.mrb[0].mxu0 %vm48_vm1, %v24_v5  ;;  %310 = vmatprep.subr.bf16.mxu1 %v379_v1  ;;  %v340_v11 = vld [vmem:[%s471_s3 + $0x28] sm:$0xff]   ;;  %v341_v12 = vld [vmem:[%s471_s3 + $0x30] sm:$0xff]   ;;  %v342_v13 = vld [vmem:[%s471_s3 + $0x38] sm:$0xff]   ;;  %p360_p1 = scmp.lt.s32.totalorder %s261_s18, %s261_s18 }
   0xa   :  { %v271_v14 = vld [vmem:[%s470_s2] ss:$0 sm:$0xff] }
   0xb   :  { %v275_v50 = vld [vmem:[%s472_s4] ss:$0 sm:$0xff]  ;;  %s355_s4 = scalar_lea.vmem %s261_s18, 128 }
   0xc   :  { %311 = vmatpush3.bf16.msra.mxu1 %v336_v7  ;;  %p356_p0 = scmp.ne.s32.totalorder %s261_s18, %s355_s4  ;;  %p361_p2 = scmp.lt.s32.totalorder %s355_s4, %s355_s4 }
   0xd   :  { %312 = vmatprep.subr.bf16.mxu1 %v379_v1 }
   0xe   :  { %p362_p3 = por %p361_p2, %p360_p1 }
  0x10   :  { %313 = vmatpush3.bf16.msra.mxu1 %v337_v8  ;;  %p363_p4 = pnand %p362_p3, %p356_p0 }
  0x11   :  { %314 = vmatprep.subr.bf16.mxu1 %v379_v1 }
  0x14   :  { %315 = vmatpush3.bf16.msra.mxu1 %v338_v9 }
  0x15   :  { %316 = vmatprep.subr.bf16.mxu1 %v379_v1 }
  0x18   :  { %317 = vmatpush3.bf16.msra.mxu1 %v339_v10 }
  0x19   :  { %318 = vmatprep.subr.bf16.mxu1 %v379_v1 }
  0x1c   :  { %319 = vmatpush3.bf16.msra.mxu1 %v340_v11 }
  0x1d   :  { %320 = vmatprep.subr.bf16.mxu1 %v379_v1 }
  0x20   :  { %321 = vmatpush3.bf16.msra.mxu1 %v341_v12 }
  0x21   :  { %322 = vmatprep.subr.bf16.mxu1 %v379_v1 }
  0x24   :  { %323 = vmatpush3.bf16.msra.mxu1 %v342_v13 }
  0xdc   :  { %v86_v15 = vpop.f32.mrb[0].mxu0 }
  0xdd   :  { %v87_v16 = vadd.f32 %v271_v14, %v86_v15  ;;  %v306_v17 = vpop.f32.mrb[1].mxu0 }
  0xde   :  { %v89_v18 = vpop.f32.mrb[2].mxu0 }
  0xdf   :  { %v95_v19 = vand.u32 2147483647, %v87_v16  ;;  %v90_v20 = vadd.f32 %v271_v14, %v89_v18  ;;  %v307_v21 = vpop.f32.mrb[3].mxu0  ;;  %v93_v44 = vmax.f32 %v87_v16, 0.0 }
  0xe1   :  { %v97_v22 = vsub.f32 0.0, %v95_v19  ;;  %v96_v23 = vand.u32 2147483647, %v90_v20  ;;  %v94_v45 = vmax.f32 %v90_v20, 0.0 }
  0xe3   :  { %v99_v24 = vmul.f32 1.442695, %v97_v22  ;;  %v98_v25 = vsub.f32 0.0, %v96_v23 }
  0xe5   :  { %343 = vpow2.f32 %v99_v24  ;;  %v101_v26 = vmul.f32 1.442695, %v98_v25 }
  0xe7   :  { %345 = vpow2.f32 %v101_v26 }
  0xef   :  { %v344_v27 = vpop.eup %343 }
  0xf0   :  { %v103_v28 = vadd.f32 1.0, %v344_v27  ;;  %v106_v31 = vmul.f32 -0.5, %v344_v27  ;;  %v109_v34 = vand.u32 2147483647, %v344_v27 }
  0xf1   :  { %v346_v29 = vpop.eup %345 }
  0xf2   :  { %347 = vlog2.f32 %v103_v28  ;;  %v112_v30 = vadd.f32 1.0, %v346_v29  ;;  %v115_v32 = vmul.f32 -0.5, %v346_v29  ;;  %v107_v33 = vadd.f32 1.0, %v106_v31 }
  0xf3   :  { %v118_v37 = vand.u32 2147483647, %v346_v29  ;;  %vm110_vm2 = vcmp.lt.f32.partialorder %v109_v34, 0.0004427343 }
  0xf4   :  { %349 = vlog2.f32 %v112_v30  ;;  %v116_v35 = vadd.f32 1.0, %v115_v32  ;;  %v108_v39 = vmul.f32 %v344_v27, %v107_v33 }
  0xf5   :  { %vm119_vm3 = vcmp.lt.f32.partialorder %v118_v37, 0.0004427343 }
  0xf6   :  { %v117_v43 = vmul.f32 %v346_v29, %v116_v35 }
  0xfc   :  { %v348_v36 = vpop.eup %347 }
  0xfd   :  { %v105_v38 = vmul.f32 0.6931472, %v348_v36 }
  0xfe   :  { %v350_v40 = vpop.eup %349 }
  0xff   :  { %v111_v41 = vsel %vm110_vm2, %v108_v39, %v105_v38  ;;  %v114_v42 = vmul.f32 0.6931472, %v350_v40 }
 0x100   :  { %v121_v47 = vadd.f32 %v111_v41, %v93_v44 }
 0x101   :  { %v120_v46 = vsel %vm119_vm3, %v117_v43, %v114_v42 }
 0x102   :  { %v122_v48 = vadd.f32 %v120_v46, %v94_v45 }
 0x104   :  { %v123_v49 = vpack.c.bf16 %v122_v48, %v121_v47 }
 0x106   :  { %325 = vmatmul.mubr.bf16.vlgmr.msra.gmra.mrb[0].mxu1 %v123_v49 }
 0x1d9   :  { %v229_v51 = vpop.f32.mrb[0].mxu1 }
 0x1da   :  { %v230_v52 = vadd.f32 %v275_v50, %v229_v51  ;;  %v326_v53 = vpop.f32.mrb[1].mxu1 }
 0x1db   :  { %v232_v54 = vpop.f32.mrb[2].mxu1 }
 0x1dc   :  { %v236_v55 = vmul.f32 0.5, %v230_v52  ;;  %v233_v56 = vadd.f32 %v275_v50, %v232_v54  ;;  %v327_v57 = vpop.f32.mrb[3].mxu1 }
 0x1de   :  { %351 = vtanh.f32 %v236_v55  ;;  %v237_v58 = vmul.f32 0.5, %v233_v56 }
 0x1e0   :  { %353 = vtanh.f32 %v237_v58 }
 0x1e8   :  { %v352_v59 = vpop.eup %351 }
 0x1e9   :  { %v240_v60 = vmul.f32 0.5, %v352_v59 }
 0x1ea   :  { %v354_v61 = vpop.eup %353 }
 0x1eb   :  { %v242_v62 = vadd.f32 0.5, %v240_v60  ;;  %v241_v63 = vmul.f32 0.5, %v354_v61 }
 0x1ed   :  { %v286_v0 = vpack.c.bf16 %v242_v62, %v242_v62  ;;  %v243_v1 = vadd.f32 0.5, %v241_v63 }
 0x1ef   :  { %253 = vst.msk [vmem:[#allocation2] sm:$0xf] %vm252_vm4, %v286_v0  ;;  %v287_v2 = vpack.c.bf16 %v243_v1, %v243_v1 }
 0x1f1   :  { %254 = vst.msk [vmem:[#allocation2 + $0x4] sm:$0xf] %vm252_vm4, %v287_v2 }
 0x1f2   :  { %366 = shalt.err (!%p363_p4)
}
 0x1f3   :  { %s367_s21 = scalar_lea.hbm %s473_s5, 128 }
 0x1f4   :  { %p368_p5 = scmp.ne.s32.totalorder %s473_s5, %s367_s21  ;;  %p371_p6 = scmp.lt.u32.totalorder %s367_s21, %s473_s5 }
 0x1f6   :  { %p373_p7 = pnand %p371_p6, %p368_p5 }
 0x1f8   :  { %376 = shalt.err (!%p373_p7)
}
 0x1f9   :  { %s382_s26 = smov 64   ;;  %s383_s27 = smov 4  }
 0x1fa   :  { %266 = dma.vmem_to_hbm [thread:$0]  %s261_s18, 128, %s473_s5, [#allocation3], %s382_s26, %s382_s26, %s383_s27  }
 0x1fb   :  { %377 = dma.done.wait [#allocation3], 128  }
 0x1fc   :  { %378 = vsyncadd [#allocation3], 4294967168 }
 0x1fd   :  { %270 = vsyncpa [#allocation3], 1 }

</bundles_post_ra>
